<compile_context>
chip_gen: v5e
topology: v5e:2x2
jax: 0.10.0
libtpu: 0.0.40
codegen_flags: <defaults>
</compile_context>

<pallas_src>
import jax
import jax.numpy as jnp
from jax.experimental import pallas as pl
from jax.experimental.pallas import tpu as pltpu


# ---------------------------------------------------------------------------
# Kernel
# ---------------------------------------------------------------------------
def _mlp_kernel(me_ref, x_ref, w1_ref, b1_ref, w2_ref, b2_ref, w3_ref, b3_ref, o_ref):
    # fc1 + ReLU (MXU matmul, f32 accumulation; bias/ReLU on the VPU in f32)
    h1 = jnp.dot(x_ref[...], w1_ref[...], preferred_element_type=jnp.float32) + b1_ref[...]
    h1 = jnp.maximum(h1, 0.0)
    # fc2 + ReLU (cast only the MXU input to the weight dtype; keep activations f32)
    h2 = jnp.dot(h1.astype(w2_ref.dtype), w2_ref[...],
                 preferred_element_type=jnp.float32) + b2_ref[...]
    h2 = jnp.maximum(h2, 0.0)
    # pred + max_error * tanh  (true-width output; tanh runs on the EUP slot)
    z = jnp.dot(h2.astype(w3_ref.dtype), w3_ref[...],
                preferred_element_type=jnp.float32) + b3_ref[...]
    o_ref[...] = (me_ref[0, 0] * jnp.tanh(z)).astype(o_ref.dtype)


# ---------------------------------------------------------------------------
# Helpers
# ---------------------------------------------------------------------------
def _round_up(n, m):
    return ((n + m - 1) // m) * m


def pad_params(params, compute_dtype=jnp.bfloat16):
    """Pack parameters for the kernel.

    Weights are stored (in_features, out_features) so every layer is x @ W + b.
    Only the *hidden* dims (VMEM-resident, not streamed per row) are zero-padded to
    multiples of 128; the streamed input width (n_inputs) and output width (n_outputs)
    are kept at their true sizes.  Padded hidden units stay exactly 0 through ReLU and
    contribute nothing downstream.  Weights are cast to `compute_dtype` (bf16 by
    default for the MXU); biases stay f32.
    """
    w1, b1, w2, b2, w3, b3 = params
    h1p = _round_up(w1.shape[1], 128)
    h2p = _round_up(w2.shape[1], 128)

    # fc1: input dim stays at n_inputs (x is streamed at true width); pad hidden -> 128k
    w1p = jnp.pad(w1, ((0, 0), (0, h1p - w1.shape[1]))).astype(compute_dtype)
    b1p = jnp.pad(b1.reshape(1, -1), ((0, 0), (0, h1p - b1.size))).astype(jnp.float32)
    # fc2: both dims are hidden -> pad both to 128k
    w2p = jnp.pad(w2, ((0, h1p - w2.shape[0]), (0, h2p - w2.shape[1]))).astype(compute_dtype)
    b2p = jnp.pad(b2.reshape(1, -1), ((0, 0), (0, h2p - b2.size))).astype(jnp.float32)
    # pred: pad only the contraction dim; output width stays n_outputs (cheap narrow store)
    w3p = jnp.pad(w3, ((0, h2p - w3.shape[0]), (0, 0))).astype(compute_dtype)
    b3p = b3.reshape(1, -1).astype(jnp.float32)

    return (w1p, b1p, w2p, b2p, w3p, b3p)


# ---------------------------------------------------------------------------
# Forward wrapper
# ---------------------------------------------------------------------------
def mlp_forward(x, padded_params, max_error, n_outputs, *, tb=4096, out_dtype=jnp.float32):
    """Fused 3-layer MLP forward.

    x              : (batch, n_inputs) float32
    padded_params  : output of pad_params()
    max_error      : python float (passed to the kernel via an SMEM scalar)
    n_outputs      : true output width
    tb             : batch tile (rows per grid step); rounded to the sublane granule
    out_dtype      : output storage dtype (f32 or bf16)
    """
    w1, b1, w2, b2, w3, b3 = padded_params
    batch, n_in = x.shape
    assert w1.shape[0] == n_in, "param/input feature mismatch"
    assert w3.shape[1] == n_outputs, "param/output width mismatch"

    # Sublane granule: 8 rows for f32 activations, 16 for bf16-streamed x.
    granule = 16 if w1.dtype == jnp.bfloat16 else 8
    batch_p = _round_up(batch, granule)

    # Large tiles amortize the ~0.35us per-step overhead; clamp for small batches.
    # Tail handling is via a partial block (cdiv grid), NOT by rounding batch up to tb.
    tb = min(_round_up(tb, granule), batch_p)
    grid = (pl.cdiv(batch_p, tb),)

    # Pad only the batch (to the sublane granule) and cast x to the MXU input dtype.
    xp = jnp.pad(x, ((0, batch_p - batch), (0, 0))).astype(w1.dtype)

    # max_error as an SMEM scalar -> changing it at runtime never recompiles.
    me = jnp.full((1, 1), max_error, dtype=jnp.float32)

    out = pl.pallas_call(
        _mlp_kernel,
        out_shape=jax.ShapeDtypeStruct((batch_p, n_outputs), out_dtype),
        grid=grid,
        in_specs=[
            # scalar in SMEM, whole array (untiled)
            pl.BlockSpec(memory_space=pltpu.MemorySpace.SMEM),
            # x: one batch tile per grid step (double-buffered by Pallas); last dim is
            # the true feature width == full array dim (legal, contiguous HBM read)
            pl.BlockSpec((tb, n_in), lambda i: (i, 0)),
            # weights / biases: full blocks, same index every step -> VMEM-resident
            pl.BlockSpec(w1.shape, lambda i: (0, 0)),
            pl.BlockSpec(b1.shape, lambda i: (0, 0)),
            pl.BlockSpec(w2.shape, lambda i: (0, 0)),
            pl.BlockSpec(b2.shape, lambda i: (0, 0)),
            pl.BlockSpec(w3.shape, lambda i: (0, 0)),
            pl.BlockSpec(b3.shape, lambda i: (0, 0)),
        ],
        # true-width output block (full last dim) -> 32x fewer output HBM bytes than a
        # 128-padded slab; masked vst accepted per perf review
        out_specs=pl.BlockSpec((tb, n_outputs), lambda i: (i, 0)),
        compiler_params=pltpu.CompilerParams(
            # batch axis is embarrassingly parallel -> megacore sharding on v7x
            dimension_semantics=("parallel",),
            # footprint at tb=4096 is a few MiB (double-buffered x/out + resident
            # weights + f32 temporaries) -- large headroom even on v7x (64 MiB/TC)
            vmem_limit_bytes=32 << 20,
        ),
    )(me, xp, w1, b1, w2, b2, w3, b3)

    # Strip the batch padding only (no lane padding to strip).
    return out[:batch]


# ---------------------------------------------------------------------------
# Parameter init + pure-JAX reference
# ---------------------------------------------------------------------------
def init_params(key, n_inputs, n_outputs, n_hidden1, n_hidden2):
    """PyTorch nn.Linear default init: U(-1/sqrt(fan_in), 1/sqrt(fan_in)).

    Weights are stored (in_features, out_features) (transposed vs torch)."""
    ks = jax.random.split(key, 6)

    def linear(kw, kb, fan_in, fan_out):
        bound = 1.0 / jnp.sqrt(jnp.float32(fan_in))
        w = jax.random.uniform(kw, (fan_in, fan_out), jnp.float32, -bound, bound)
        b = jax.random.uniform(kb, (1, fan_out), jnp.float32, -bound, bound)
        return w, b

    w1, b1 = linear(ks[0], ks[1], n_inputs, n_hidden1)
    w2, b2 = linear(ks[2], ks[3], n_hidden1, n_hidden2)
    w3, b3 = linear(ks[4], ks[5], n_hidden2, n_outputs)
    return (w1, b1, w2, b2, w3, b3)


def mlp_reference(x, params, max_error):
    w1, b1, w2, b2, w3, b3 = params
    h1 = jnp.maximum(x @ w1 + b1, 0.0)
    h2 = jnp.maximum(h1 @ w2 + b2, 0.0)
    return max_error * jnp.tanh(h2 @ w3 + b3)


# ---------------------------------------------------------------------------
# Test
# ---------------------------------------------------------------------------
if __name__ == "__main__":
    n_inputs, n_outputs = 8, 4
    n_hidden1, n_hidden2 = 32, 32
    max_error = 2.5

    key = jax.random.PRNGKey(0)
    k_x1, k_x2, k_p = jax.random.split(key, 3)
    params = init_params(k_p, n_inputs, n_outputs, n_hidden1, n_hidden2)

    # --- f32 path: exact match vs reference (single small tile) -------------
    batch = 8
    x = jax.random.normal(k_x1, (batch, n_inputs), jnp.float32)
    ref = mlp_reference(x, params, max_error)
    padded_f32 = pad_params(params, compute_dtype=jnp.float32)
    out_f32 = jax.block_until_ready(
        mlp_forward(x, padded_f32, max_error, n_outputs, out_dtype=jnp.float32))
    assert out_f32.shape == (batch, n_outputs)
    assert jnp.allclose(out_f32, ref, atol=1e-5, rtol=1e-5), "f32 Pallas output mismatch"

    # --- bf16 streaming path (f32 accumulation), multi-step grid with a -----
    # --- partial tail tile, bf16 output store; loose sanity check -----------
    # NOTE: x itself is quantized to bf16 before the first matmul on this path.
    batch2 = 40
    x2 = jax.random.normal(k_x2, (batch2, n_inputs), jnp.float32)
    ref2 = mlp_reference(x2, params, max_error)
    padded_bf16 = pad_params(params, compute_dtype=jnp.bfloat16)
    out_bf16 = jax.block_until_ready(
        mlp_forward(x2, padded_bf16, max_error, n_outputs, tb=32, out_dtype=jnp.bfloat16))
    assert out_bf16.shape == (batch2, n_outputs)
    assert jnp.allclose(out_bf16.astype(jnp.float32), ref2, atol=1e-1, rtol=1e-1), \
        "bf16 Pallas output mismatch"

    print("KERNEL_OK")
</pallas_src>

<mosaic_0001>
module attributes {stable_mosaic.version = 11 : i64} {
  func.func @_mlp_kernel(%arg0: i32, %arg1: memref<1x1xf32, #tpu.memory_space<smem>>, %arg2: memref<8x8xf32, #tpu.memory_space<vmem>>, %arg3: memref<8x128xf32, #tpu.memory_space<vmem>>, %arg4: memref<1x128xf32, #tpu.memory_space<vmem>>, %arg5: memref<128x128xf32, #tpu.memory_space<vmem>>, %arg6: memref<1x128xf32, #tpu.memory_space<vmem>>, %arg7: memref<128x4xf32, #tpu.memory_space<vmem>>, %arg8: memref<1x4xf32, #tpu.memory_space<vmem>>, %arg9: memref<8x4xf32, #tpu.memory_space<vmem>>) attributes {dimension_semantics = [#tpu.dimension_semantics<parallel>], iteration_bounds = array<i64: 1>, scalar_prefetch = 0 : i64, scratch_operands = 0 : i64, tpu.core_type = #tpu.core_type<tc>, window_params = [{transform_indices = @transform_0, window_bounds = array<i64: 1, 1>}, {transform_indices = @transform_1, window_bounds = array<i64: 8, 8>}, {pipeline_mode = #tpu.pipeline_mode<synchronous>, transform_indices = @transform_2, window_bounds = array<i64: 8, 128>}, {pipeline_mode = #tpu.pipeline_mode<synchronous>, transform_indices = @transform_3, window_bounds = array<i64: 1, 128>}, {pipeline_mode = #tpu.pipeline_mode<synchronous>, transform_indices = @transform_4, window_bounds = array<i64: 128, 128>}, {pipeline_mode = #tpu.pipeline_mode<synchronous>, transform_indices = @transform_5, window_bounds = array<i64: 1, 128>}, {pipeline_mode = #tpu.pipeline_mode<synchronous>, transform_indices = @transform_6, window_bounds = array<i64: 128, 4>}, {pipeline_mode = #tpu.pipeline_mode<synchronous>, transform_indices = @transform_7, window_bounds = array<i64: 1, 4>}, {transform_indices = @transform_8, window_bounds = array<i64: 8, 4>}]} {
    %c0 = arith.constant 0 : index
    %c0_0 = arith.constant 0 : index
    %0 = vector.load %arg2[%c0, %c0_0] : memref<8x8xf32, #tpu.memory_space<vmem>>, vector<8x8xf32>
    %c0_1 = arith.constant 0 : index
    %c0_2 = arith.constant 0 : index
    %1 = vector.load %arg3[%c0_1, %c0_2] : memref<8x128xf32, #tpu.memory_space<vmem>>, vector<8x128xf32>
    %cst = arith.constant dense<0.000000e+00> : vector<8x128xf32>
    %2 = tpu.matmul %0, %1, %cst {dimension_numbers = #tpu.dot_dimension_numbers<[1], [0], [0], [1], [0, 0, 1, 1], [], []>} : vector<8x8xf32>, vector<8x128xf32>, vector<8x128xf32> -> vector<8x128xf32>
    %c0_3 = arith.constant 0 : index
    %c0_4 = arith.constant 0 : index
    %3 = vector.load %arg4[%c0_3, %c0_4] : memref<1x128xf32, #tpu.memory_space<vmem>>, vector<1x128xf32>
    %4 = vector.broadcast %3 : vector<1x128xf32> to vector<8x128xf32>
    %5 = arith.addf %2, %4 : vector<8x128xf32>
    %cst_5 = arith.constant 0.000000e+00 : f32
    %6 = vector.broadcast %cst_5 : f32 to vector<8x128xf32>
    %7 = arith.maximumf %5, %6 : vector<8x128xf32>
    %c0_6 = arith.constant 0 : index
    %c0_7 = arith.constant 0 : index
    %8 = vector.load %arg5[%c0_6, %c0_7] : memref<128x128xf32, #tpu.memory_space<vmem>>, vector<128x128xf32>
    %cst_8 = arith.constant dense<0.000000e+00> : vector<8x128xf32>
    %9 = tpu.matmul %7, %8, %cst_8 {dimension_numbers = #tpu.dot_dimension_numbers<[1], [0], [0], [1], [0, 0, 1, 1], [], []>} : vector<8x128xf32>, vector<128x128xf32>, vector<8x128xf32> -> vector<8x128xf32>
    %c0_9 = arith.constant 0 : index
    %c0_10 = arith.constant 0 : index
    %10 = vector.load %arg6[%c0_9, %c0_10] : memref<1x128xf32, #tpu.memory_space<vmem>>, vector<1x128xf32>
    %11 = vector.broadcast %10 : vector<1x128xf32> to vector<8x128xf32>
    %12 = arith.addf %9, %11 : vector<8x128xf32>
    %cst_11 = arith.constant 0.000000e+00 : f32
    %13 = vector.broadcast %cst_11 : f32 to vector<8x128xf32>
    %14 = arith.maximumf %12, %13 : vector<8x128xf32>
    %c0_12 = arith.constant 0 : index
    %c0_13 = arith.constant 0 : index
    %15 = vector.load %arg7[%c0_12, %c0_13] : memref<128x4xf32, #tpu.memory_space<vmem>>, vector<128x4xf32>
    %cst_14 = arith.constant dense<0.000000e+00> : vector<8x4xf32>
    %16 = tpu.matmul %14, %15, %cst_14 {dimension_numbers = #tpu.dot_dimension_numbers<[1], [0], [0], [1], [0, 0, 1, 1], [], []>} : vector<8x128xf32>, vector<128x4xf32>, vector<8x4xf32> -> vector<8x4xf32>
    %c0_15 = arith.constant 0 : index
    %c0_16 = arith.constant 0 : index
    %17 = vector.load %arg8[%c0_15, %c0_16] : memref<1x4xf32, #tpu.memory_space<vmem>>, vector<1x4xf32>
    %18 = vector.broadcast %17 : vector<1x4xf32> to vector<8x4xf32>
    %19 = arith.addf %16, %18 : vector<8x4xf32>
    %c0_17 = arith.constant 0 : index
    %c0_18 = arith.constant 0 : index
    %20 = memref.load %arg1[%c0_17, %c0_18] : memref<1x1xf32, #tpu.memory_space<smem>>
    %21 = math.tanh %19 : vector<8x4xf32>
    %22 = vector.broadcast %20 : f32 to vector<8x4xf32>
    %23 = arith.mulf %22, %21 : vector<8x4xf32>
    %c0_19 = arith.constant 0 : index
    %c0_20 = arith.constant 0 : index
    %24 = vector.load %arg9[%c0_19, %c0_20] : memref<8x4xf32, #tpu.memory_space<vmem>>, vector<8x4xf32>
    tpu.vector_store %arg9[%c0_19, %c0_20], %23 {strides = array<i32>} : memref<8x4xf32, #tpu.memory_space<vmem>>, vector<8x4xf32>,
    return
  }
  func.func @transform_0(%arg0: i32) -> (i32, i32) {
    %c0_i32 = arith.constant 0 : i32
    %c0_i32_0 = arith.constant 0 : i32
    %c0_i32_1 = arith.constant 0 : i32
    return %c0_i32, %c0_i32_0 : i32, i32
  }
  func.func @transform_1(%arg0: i32) -> (i32, i32) {
    %c0_i32 = arith.constant 0 : i32
    %c0_i32_0 = arith.constant 0 : i32
    return %arg0, %c0_i32 : i32, i32
  }
  func.func @transform_2(%arg0: i32) -> (i32, i32) {
    %c0_i32 = arith.constant 0 : i32
    %c0_i32_0 = arith.constant 0 : i32
    %c0_i32_1 = arith.constant 0 : i32
    return %c0_i32, %c0_i32_0 : i32, i32
  }
  func.func @transform_3(%arg0: i32) -> (i32, i32) {
    %c0_i32 = arith.constant 0 : i32
    %c0_i32_0 = arith.constant 0 : i32
    %c0_i32_1 = arith.constant 0 : i32
    return %c0_i32, %c0_i32_0 : i32, i32
  }
  func.func @transform_4(%arg0: i32) -> (i32, i32) {
    %c0_i32 = arith.constant 0 : i32
    %c0_i32_0 = arith.constant 0 : i32
    %c0_i32_1 = arith.constant 0 : i32
    return %c0_i32, %c0_i32_0 : i32, i32
  }
  func.func @transform_5(%arg0: i32) -> (i32, i32) {
    %c0_i32 = arith.constant 0 : i32
    %c0_i32_0 = arith.constant 0 : i32
    %c0_i32_1 = arith.constant 0 : i32
    return %c0_i32, %c0_i32_0 : i32, i32
  }
  func.func @transform_6(%arg0: i32) -> (i32, i32) {
    %c0_i32 = arith.constant 0 : i32
    %c0_i32_0 = arith.constant 0 : i32
    %c0_i32_1 = arith.constant 0 : i32
    return %c0_i32, %c0_i32_0 : i32, i32
  }
  func.func @transform_7(%arg0: i32) -> (i32, i32) {
    %c0_i32 = arith.constant 0 : i32
    %c0_i32_0 = arith.constant 0 : i32
    %c0_i32_1 = arith.constant 0 : i32
    return %c0_i32, %c0_i32_0 : i32, i32
  }
  func.func @transform_8(%arg0: i32) -> (i32, i32) {
    %c0_i32 = arith.constant 0 : i32
    %c0_i32_0 = arith.constant 0 : i32
    return %arg0, %c0_i32 : i32, i32
  }
}

</mosaic_0001>

<bundles_post_ra>
// kernel: tpu_custom_call.1
= control target key start
LH: loop header
LB: loop body
LE: loop exit
PB: predicated region body
PF: predicated region fallthrough
CT: control target
= control target key end

     0   :  { %14 = vsyncpa [#allocation4], 0  ;;  %s406_s0 = inlined_call_operand.<no memory space> [shape: f32[1,1], index: 0, kind: input, shape index: {}]   ;;  %s407_s1 = inlined_call_operand.hbm [shape: f32[8,8], index: 1, kind: input, shape index: {}]   ;;  %s408_s2 = inlined_call_operand.hbm [shape: f32[8,128], index: 2, kind: input, shape index: {}]   ;;  %s409_s3 = inlined_call_operand.vmem [shape: f32[1,128], index: 3, kind: input, shape index: {}]   ;;  %s410_s4 = inlined_call_operand.vmem [shape: f32[128,128], index: 4, kind: input, shape index: {}]   ;;  %s411_s5 = inlined_call_operand.vmem [shape: f32[1,128], index: 5, kind: input, shape index: {}]   ;;  %s412_s6 = inlined_call_operand.vmem [shape: f32[128,4], index: 6, kind: input, shape index: {}]   ;;  %s413_s7 = inlined_call_operand.vmem [shape: f32[1,4], index: 7, kind: input, shape index: {}]   ;;  %s414_s8 = inlined_call_operand.vmem [shape: f32[8,4], index: 8, kind: output, shape index: {}]  }
   0x1   :  { %s23_s29 = sshll.u32 %s407_s1, 4  ;;  %s24_s29 = int_to_ptr.hbm [resolvable:$true] %s23_s29 }
   0x2   :  { %15 = vsyncpa [#allocation6], 0  ;;  %s242_s30 = smov [#allocation3]   ;;  %s34_s12 = sshll.u32 %s408_s2, 4  ;;  %s35_s12 = int_to_ptr.hbm [resolvable:$true] %s34_s12 }
   0x3   :  { %s25_s9 = sshll.u32 %s242_s30, 4  ;;  %s243_s13 = smov [#allocation5]   ;;  %s26_s9 = int_to_ptr.vmem [resolvable:$true] %s25_s9 }
   0x4   :  { %28 = dma.hbm_to_vmem [thread:$0]  %s24_s29, 128, %s26_s9, [#allocation4]  }
   0x5   :  { %s36_s14 = sshll.u32 %s243_s13, 4  ;;  %s37_s14 = int_to_ptr.vmem [resolvable:$true] %s36_s14 }
   0x6   :  { %39 = dma.hbm_to_vmem [thread:$0]  %s35_s12, 128, %s37_s14, [#allocation6]  }
   0x7   :  { %238 = dma.done.wait [#allocation4], 128  }
   0x8   :  { %239 = vsyncadd [#allocation4], 4294967168 }
   0x9   :  { %240 = dma.done.wait [#allocation6], 128  }
   0xa   :  { %241 = vsyncadd [#allocation6], 4294967168  ;;  %vm64_vm0 = vcmask 64512   ;;  %v59_v0 = vld [vmem:[#allocation5] sm:$0xff]  ;;  %v58_v1 = vld [vmem:[#allocation3] sm:$0xff]  ;;  %v172_v45 = vstv %s406_s0  ;;  %vm174_vm1 = vcmask 31744  }
   0xb   :  { %v104_v2 = vld [vmem:[%s410_s4 + $0x78] sm:$0xff]  ;;  %83 = vmatpush.msra.mxu0 %v59_v0  ;;  %v103_v3 = vld [vmem:[%s410_s4 + $0x70] sm:$0xff]  ;;  %v102_v4 = vld [vmem:[%s410_s4 + $0x68] sm:$0xff] }
   0xc   :  { %109 = vmatpush.msra.mxu1 %v104_v2  ;;  %182 = vmatmul.msk.f32.vlgmr.msra.gmra.mxu0 %vm64_vm0, %v58_v1  ;;  %v101_v5 = vld [vmem:[%s410_s4 + $0x60] sm:$0xff]  ;;  %v100_v6 = vld [vmem:[%s410_s4 + $0x58] sm:$0xff]  ;;  %v99_v7 = vld [vmem:[%s410_s4 + $0x50] sm:$0xff] }
   0xd   :  { %v98_v8 = vld [vmem:[%s410_s4 + $0x48] sm:$0xff]  ;;  %v97_v9 = vld [vmem:[%s410_s4 + $0x40] sm:$0xff]  ;;  %v96_v10 = vld [vmem:[%s410_s4 + $0x38] sm:$0xff] }
   0xe   :  { %110 = vmatpush.msra.mxu1 %v103_v3  ;;  %v95_v11 = vld [vmem:[%s410_s4 + $0x30] sm:$0xff]  ;;  %v94_v12 = vld [vmem:[%s410_s4 + $0x28] sm:$0xff]  ;;  %v93_v13 = vld [vmem:[%s410_s4 + $0x20] sm:$0xff] }
   0xf   :  { %v92_v14 = vld [vmem:[%s410_s4 + $0x18] sm:$0xff]  ;;  %v91_v15 = vld [vmem:[%s410_s4 + $0x10] sm:$0xff]  ;;  %v90_v16 = vld [vmem:[%s410_s4 + $0x8] sm:$0xff] }
  0x10   :  { %111 = vmatpush.msra.mxu1 %v102_v4  ;;  %v89_v17 = vld [vmem:[%s410_s4] sm:$0xff]  ;;  %v145_v18 = vld [vmem:[%s412_s6 + $0x78] sm:$0xff]  ;;  %v144_v19 = vld [vmem:[%s412_s6 + $0x70] sm:$0xff] }
  0x11   :  { %150 = vmatpush.msra.mxu2 %v145_v18  ;;  %v143_v20 = vld [vmem:[%s412_s6 + $0x68] sm:$0xff]  ;;  %v142_v21 = vld [vmem:[%s412_s6 + $0x60] sm:$0xff]  ;;  %v141_v22 = vld [vmem:[%s412_s6 + $0x58] sm:$0xff] }
  0x12   :  { %112 = vmatpush.msra.mxu1 %v101_v5  ;;  %v140_v23 = vld [vmem:[%s412_s6 + $0x50] sm:$0xff]  ;;  %v139_v24 = vld [vmem:[%s412_s6 + $0x48] sm:$0xff]  ;;  %v138_v25 = vld [vmem:[%s412_s6 + $0x40] sm:$0xff] }
  0x13   :  { %151 = vmatpush.msra.mxu2 %v144_v19  ;;  %v137_v26 = vld [vmem:[%s412_s6 + $0x38] sm:$0xff]  ;;  %v136_v27 = vld [vmem:[%s412_s6 + $0x30] sm:$0xff]  ;;  %v135_v28 = vld [vmem:[%s412_s6 + $0x28] sm:$0xff] }
  0x14   :  { %113 = vmatpush.msra.mxu1 %v100_v6  ;;  %v134_v29 = vld [vmem:[%s412_s6 + $0x20] sm:$0xff]  ;;  %v133_v30 = vld [vmem:[%s412_s6 + $0x18] sm:$0xff]  ;;  %v132_v35 = vld [vmem:[%s412_s6 + $0x10] sm:$0xff] }
  0x15   :  { %152 = vmatpush.msra.mxu2 %v143_v20  ;;  %v185_v31 = vld [vmem:[%s409_s3] ss:$0 sm:$0xff]  ;;  %v131_v36 = vld [vmem:[%s412_s6 + $0x8] sm:$0xff] }
  0x16   :  { %114 = vmatpush.msra.mxu1 %v99_v7  ;;  %v130_v37 = vld [vmem:[%s412_s6] sm:$0xff] }
  0x17   :  { %153 = vmatpush.msra.mxu2 %v142_v21  ;;  %v186_v38 = vld [vmem:[%s411_s5] ss:$0 sm:$0xff] }
  0x18   :  { %115 = vmatpush.msra.mxu1 %v98_v8  ;;  %v187_v42 = vld [vmem:[%s413_s7] ss:$0 sm:$0xff] }
  0x19   :  { %154 = vmatpush.msra.mxu2 %v141_v22 }
  0x1a   :  { %116 = vmatpush.msra.mxu1 %v97_v9 }
  0x1b   :  { %155 = vmatpush.msra.mxu2 %v140_v23 }
  0x1c   :  { %117 = vmatpush.msra.mxu1 %v96_v10 }
  0x1d   :  { %156 = vmatpush.msra.mxu2 %v139_v24 }
  0x1e   :  { %118 = vmatpush.msra.mxu1 %v95_v11 }
  0x1f   :  { %157 = vmatpush.msra.mxu2 %v138_v25 }
  0x20   :  { %119 = vmatpush.msra.mxu1 %v94_v12 }
  0x21   :  { %158 = vmatpush.msra.mxu2 %v137_v26 }
  0x22   :  { %120 = vmatpush.msra.mxu1 %v93_v13 }
  0x23   :  { %159 = vmatpush.msra.mxu2 %v136_v27 }
  0x24   :  { %121 = vmatpush.msra.mxu1 %v92_v14 }
  0x25   :  { %160 = vmatpush.msra.mxu2 %v135_v28 }
  0x26   :  { %122 = vmatpush.msra.mxu1 %v91_v15 }
  0x27   :  { %161 = vmatpush.msra.mxu2 %v134_v29 }
  0x28   :  { %123 = vmatpush.msra.mxu1 %v90_v16 }
  0x29   :  { %162 = vmatpush.msra.mxu2 %v133_v30 }
  0x2a   :  { %124 = vmatpush.msra.mxu1 %v89_v17 }
  0x2b   :  { %163 = vmatpush.msra.mxu2 %v132_v35 }
  0x2d   :  { %164 = vmatpush.msra.mxu2 %v131_v36 }
  0x2f   :  { %165 = vmatpush.msra.mxu2 %v130_v37 }
  0x89   :  { %v85_v32 = vpop.f32.mrf.mxu0 }
  0x8a   :  { %v86_v33 = vadd.f32 %v185_v31, %v85_v32 }
  0x8c   :  { %v88_v34 = vmax.f32 %v86_v33, 0.0 }
  0x8e   :  { %125 = vmatmul.f32.vlgmr.msra.gmra.mxu1 %v88_v34 }
 0x10b   :  { %v126_v39 = vpop.f32.mrf.mxu1 }
 0x10c   :  { %v127_v40 = vadd.f32 %v186_v38, %v126_v39 }
 0x10e   :  { %v129_v41 = vmax.f32 %v127_v40, 0.0 }
 0x110   :  { %166 = vmatmul.f32.vlgmr.msra.gmra.mxu2 %v129_v41 }
 0x193   :  { %v167_v43 = vpop.f32.mrf.mxu2 }
 0x194   :  { %v168_v44 = vadd.f32 %v187_v42, %v167_v43 }
 0x196   :  { %188 = vtanh.f32 %v168_v44 }
 0x19c   :  { %v189_v46 = vpop.eup %188 }
 0x19d   :  { %v173_v47 = vmul.f32 %v189_v46, %v172_v45 }
 0x19f   :  { %175 = vst.msk [vmem:[%s414_s8] sm:$0xff] %vm174_vm1, %v173_v47 }
 0x1a0   :  { %180 = vsyncpa [#allocation4], 1 }
 0x1a1   :  { %181 = vsyncpa [#allocation6], 1 }

</bundles_post_ra>
